<compile_context>
chip_gen: v7x
topology: tpu7x:2x2x1
jax: 0.10.0
libtpu: 0.0.40
codegen_flags: <defaults>
</compile_context>

<pallas_src>
import functools

import jax
import jax.numpy as jnp
from jax.experimental import pallas as pl
from jax.experimental.pallas import tpu as pltpu

NUM_ROUTING_ITERATIONS = 3


def _softmax(x, axis):
    m = jnp.max(x, axis=axis, keepdims=True)
    e = jnp.exp(x - m)
    return e / jnp.sum(e, axis=axis, keepdims=True)


def _squash(t, axis=-1):
    # NOTE: no epsilon under the sqrt, to match the PyTorch reference exactly.
    sq = jnp.sum(t * t, axis=axis, keepdims=True)
    scale = sq / (1.0 + sq)
    return scale * t / jnp.sqrt(sq)


def _round_up(x, m):
    return (x + m - 1) // m * m


# ----------------------- shared fused matmul + bias + group-squash kernel -----------------------
def _matmul_squash_kernel(x_ref, w_ref, b_ref, out_ref, acc_ref, *,
                          NC, Co, squash_axis, scale):
    # x_ref : (tm, tk) bf16      w_ref : (tk, NC*Co) bf16     b_ref : (1, NC*Co) f32
    # out_ref: (tm, NC*Co) f32 (lane-dense)    acc_ref: (tm, NC*Co) f32 VMEM accumulator
    k = pl.program_id(1)

    @pl.when(k == 0)
    def _():
        acc_ref[...] = jnp.zeros_like(acc_ref)

    acc_ref[...] += jnp.dot(x_ref[...], w_ref[...], preferred_element_type=jnp.float32)

    @pl.when(k == pl.num_programs(1) - 1)
    def _():
        y = acc_ref[...] * scale + b_ref[...]
        m = y.shape[0]
        y3 = y.reshape(m, NC, Co)
        sq = jnp.sum(y3 * y3, axis=squash_axis, keepdims=True)  # squash over NC or Co sub-axis
        v = (sq / (1.0 + sq)) * y3 / jnp.sqrt(sq)                # no eps (parity with PyTorch)
        out_ref[...] = v.reshape(m, NC * Co).astype(out_ref.dtype)


def _matmul_squash(x, w, b, *, NC, Co, squash_axis, scale):
    """(M,K) x (K,N) + b, then squash of each row viewed as (NC, Co) along `squash_axis`.

    x/w are bf16, b is f32 of shape (1, N). Returns (M, N) f32."""
    M, K = x.shape
    N = w.shape[1]
    assert N == NC * Co

    TM_MAX, TK_MAX = 256, 512
    # If a dim is tiled, the tile must be (8,128)-aligned; otherwise use the full dim.
    tm = TM_MAX if M > TM_MAX else M
    tk = TK_MAX if K > TK_MAX else K
    M_pad = _round_up(M, tm) if M > TM_MAX else M
    K_pad = _round_up(K, tk) if K > TK_MAX else K
    if (M_pad, K_pad) != (M, K):
        x = jnp.pad(x, ((0, M_pad - M), (0, K_pad - K)))
    if K_pad != K:
        w = jnp.pad(w, ((0, K_pad - K), (0, 0)))

    grid = (M_pad // tm, K_pad // tk)
    out = pl.pallas_call(
        functools.partial(_matmul_squash_kernel, NC=NC, Co=Co,
                          squash_axis=squash_axis, scale=scale),
        out_shape=jax.ShapeDtypeStruct((M_pad, N), jnp.float32),
        grid_spec=pltpu.PrefetchScalarGridSpec(
            num_scalar_prefetch=0,
            grid=grid,
            in_specs=[
                pl.BlockSpec((tm, tk), lambda i, k: (i, k)),
                pl.BlockSpec((tk, N), lambda i, k: (k, 0)),
                pl.BlockSpec((1, N), lambda i, k: (0, 0)),
            ],
            out_specs=pl.BlockSpec((tm, N), lambda i, k: (i, 0)),
            scratch_shapes=[pltpu.VMEM((tm, N), jnp.float32)],
        ),
        compiler_params=pltpu.CompilerParams(
            dimension_semantics=("parallel", "arbitrary")),
    )(x, w, b)
    return out[:M] if M_pad != M else out


# ----------------------- routing branch (num_route_nodes != -1) -----------------------
def capsule_layer_routing(x, W, num_iterations=NUM_ROUTING_ITERATIONS):
    """x: (B, R, Ci), W: (NC, R, Ci, Co) -> (NC, B, 1, 1, Co)  (matches PyTorch).

    `num_iterations` is accepted for API parity; because the PyTorch forward returns
    inside the first loop iteration, the result is independent of it (for >= 1)."""
    del num_iterations
    B, R, Ci = x.shape
    NC, _, _, Co = W.shape
    x_flat = x.reshape(B, R * Ci).astype(jnp.bfloat16)                            # (B, R*Ci)
    # w_flat[(r,ci), n*Co + o] = W[n, r, ci, o]
    w_flat = W.transpose(1, 2, 0, 3).reshape(R * Ci, NC * Co).astype(jnp.bfloat16)
    b_zero = jnp.zeros((1, NC * Co), jnp.float32)
    out = _matmul_squash(x_flat, w_flat, b_zero, NC=NC, Co=Co,
                         squash_axis=2, scale=1.0 / R)                            # (B, NC*Co)
    v = out.reshape(B, NC, Co).transpose(1, 0, 2)                                 # (NC, B, Co)
    return v[:, :, None, None, :]


# ----------------------- conv branch (num_route_nodes == -1) -----------------------
def capsule_layer_conv(x, conv_w, conv_b, stride):
    """x: (B, Ci, H, W); conv_w: (NC, Co, Ci, kh, kw); conv_b: (NC, Co).
    Returns u of shape (B, Co*H'*W', NC)  (matches PyTorch)."""
    B = x.shape[0]
    NC, Co, Ci, kh, kw = conv_w.shape
    # One fused im2col op; output channels ordered (ci, kh, kw), matching OIHW weights.
    # TODO(synk): the im2col + layout transposes stay as plain XLA ops in the wrapper.
    patches = jax.lax.conv_general_dilated_patches(
        x, (kh, kw), (stride, stride), 'VALID',
        dimension_numbers=('NCHW', 'OIHW', 'NCHW'))                 # (B, K, Ho, Wo)
    _, K, Ho, Wo = patches.shape
    P = Ho * Wo
    patches = (patches.reshape(B, K, P).transpose(0, 2, 1)
               .reshape(B * P, K).astype(jnp.bfloat16))             # (B*P, K)
    # w_all[(ci,kh,kw), n*Co + o] = conv_w[n, o, ci, kh, kw]
    w_all = conv_w.transpose(2, 3, 4, 0, 1).reshape(K, NC * Co).astype(jnp.bfloat16)
    b_all = conv_b.reshape(1, NC * Co).astype(jnp.float32)

    out = _matmul_squash(patches, w_all, b_all, NC=NC, Co=Co,
                         squash_axis=1, scale=1.0)                  # (B*P, NC*Co)
    # out[b*P + p, n*Co + o] -> PyTorch layout u[b, o*P + p, n]
    u = out.reshape(B, P, NC, Co).transpose(0, 3, 1, 2).reshape(B, Co * P, NC)
    return u


# ----------------------- plain-JAX references (for correctness check) -----------------------
def _routing_ref(x, W, num_iterations=NUM_ROUTING_ITERATIONS):
    u = x[None, :, :, None, :]
    Wb = W[:, None, :, :, :]
    u_hat = jnp.matmul(u, Wb, precision=jax.lax.Precision.HIGHEST)
    b_ij = jnp.zeros(u_hat.shape, jnp.float32)
    for i in range(num_iterations):
        c_ij = _softmax(b_ij, axis=2)
        s_ij = jnp.sum(c_ij * u_hat, axis=2, keepdims=True)
        v_j = _squash(s_ij, axis=-1)
        if i < num_iterations - 1:
            a_ij = jnp.sum(v_j * u_hat, axis=-1, keepdims=True)
            b_ij = b_ij + a_ij
        return v_j  # same early return as the PyTorch reference


def _conv_ref(x, conv_w, conv_b, stride):
    B = x.shape[0]
    us = []
    for c in range(conv_w.shape[0]):
        y = jax.lax.conv_general_dilated(
            x, conv_w[c], window_strides=(stride, stride), padding='VALID',
            dimension_numbers=('NCHW', 'OIHW', 'NCHW'),
            precision=jax.lax.Precision.HIGHEST)
        y = y + conv_b[c][None, :, None, None]
        us.append(y.reshape(B, -1, 1))
    u = jnp.concatenate(us, axis=-1)
    return _squash(u, axis=-1)


if __name__ == "__main__":
    key = jax.random.PRNGKey(0)
    k1, k2, k3, k4, k5 = jax.random.split(key, 5)

    # --- routing branch (DigitCaps-style): x is (B, num_route_nodes, in_channels) ---
    B, NC_r, R, Ci_r, Co_r = 2, 4, 8, 8, 16
    x_routing = jax.random.normal(k1, (B, R, Ci_r), dtype=jnp.float32)
    W_routing = jax.random.normal(k2, (NC_r, R, Ci_r, Co_r), dtype=jnp.float32)  # ~torch.randn

    v = jax.block_until_ready(capsule_layer_routing(x_routing, W_routing))
    v_ref = _routing_ref(x_routing, W_routing)
    assert v.shape == (NC_r, B, 1, 1, Co_r), v.shape
    assert float(jnp.max(jnp.abs(v - v_ref))) < 5e-2

    # --- conv branch (PrimaryCaps-style): x is NCHW ---
    NC_c, Ci_c, Co_c, ksz, stride = 4, 4, 8, 9, 2
    x_conv = jax.random.normal(k3, (B, Ci_c, 16, 16), dtype=jnp.float32)
    conv_w = 0.05 * jax.random.normal(k4, (NC_c, Co_c, Ci_c, ksz, ksz), dtype=jnp.float32)
    conv_b = 0.05 * jax.random.normal(k5, (NC_c, Co_c), dtype=jnp.float32)

    u = jax.block_until_ready(capsule_layer_conv(x_conv, conv_w, conv_b, stride))
    u_ref = _conv_ref(x_conv, conv_w, conv_b, stride)
    Ho = (16 - ksz) // stride + 1
    assert u.shape == (B, Co_c * Ho * Ho, NC_c), u.shape
    assert float(jnp.max(jnp.abs(u - u_ref))) < 5e-2

    print("KERNEL_OK")
</pallas_src>

<mosaic_0001>
module attributes {stable_mosaic.version = 11 : i64} {
  func.func @_matmul_squash_kernel(%arg0: i32, %arg1: i32, %arg2: memref<2x64xbf16, #tpu.memory_space<vmem>>, %arg3: memref<64x64xbf16, #tpu.memory_space<vmem>>, %arg4: memref<1x64xf32, #tpu.memory_space<vmem>>, %arg5: memref<2x64xf32, #tpu.memory_space<vmem>>, %arg6: memref<2x64xf32, #tpu.memory_space<vmem>>) attributes {dimension_semantics = [#tpu.dimension_semantics<parallel>, #tpu.dimension_semantics<arbitrary>], iteration_bounds = array<i64: 1, 1>, scalar_prefetch = 0 : i64, scratch_operands = 1 : i64, tpu.core_type = #tpu.core_type<tc>, window_params = [{transform_indices = @transform_0, window_bounds = array<i64: 2, 64>}, {transform_indices = @transform_1, window_bounds = array<i64: 64, 64>}, {pipeline_mode = #tpu.pipeline_mode<synchronous>, transform_indices = @transform_2, window_bounds = array<i64: 1, 64>}, {transform_indices = @transform_3, window_bounds = array<i64: 2, 64>}]} {
    %c0_i32 = arith.constant 0 : i32
    %0 = arith.cmpi eq, %arg1, %c0_i32 : i32
    %1 = arith.extui %0 : i1 to i32
    %c0_i32_0 = arith.constant 0 : i32
    %2 = arith.cmpi ne, %1, %c0_i32_0 : i32
    scf.if %2 {
      %cst_10 = arith.constant 0.000000e+00 : f32
      %12 = vector.broadcast %cst_10 : f32 to vector<2x64xf32>
      %c0_11 = arith.constant 0 : index
      %c0_12 = arith.constant 0 : index
      %13 = vector.load %arg6[%c0_11, %c0_12] : memref<2x64xf32, #tpu.memory_space<vmem>>, vector<2x64xf32>
      tpu.vector_store %arg6[%c0_11, %c0_12], %12 {strides = array<i32>} : memref<2x64xf32, #tpu.memory_space<vmem>>, vector<2x64xf32>,
    } else {
    }
    %c0 = arith.constant 0 : index
    %c0_1 = arith.constant 0 : index
    %3 = vector.load %arg6[%c0, %c0_1] : memref<2x64xf32, #tpu.memory_space<vmem>>, vector<2x64xf32>
    %c0_2 = arith.constant 0 : index
    %c0_3 = arith.constant 0 : index
    %4 = vector.load %arg2[%c0_2, %c0_3] : memref<2x64xbf16, #tpu.memory_space<vmem>>, vector<2x64xbf16>
    %c0_4 = arith.constant 0 : index
    %c0_5 = arith.constant 0 : index
    %5 = vector.load %arg3[%c0_4, %c0_5] : memref<64x64xbf16, #tpu.memory_space<vmem>>, vector<64x64xbf16>
    %cst = arith.constant dense<0.000000e+00> : vector<2x64xf32>
    %6 = tpu.matmul %4, %5, %cst {dimension_numbers = #tpu.dot_dimension_numbers<[1], [0], [0], [1], [0, 0, 1, 1], [], []>} : vector<2x64xbf16>, vector<64x64xbf16>, vector<2x64xf32> -> vector<2x64xf32>
    %7 = arith.addf %3, %6 : vector<2x64xf32>
    %c0_6 = arith.constant 0 : index
    %c0_7 = arith.constant 0 : index
    %8 = vector.load %arg6[%c0_6, %c0_7] : memref<2x64xf32, #tpu.memory_space<vmem>>, vector<2x64xf32>
    tpu.vector_store %arg6[%c0_6, %c0_7], %7 {strides = array<i32>} : memref<2x64xf32, #tpu.memory_space<vmem>>, vector<2x64xf32>,
    %c0_i32_8 = arith.constant 0 : i32
    %9 = arith.cmpi eq, %arg1, %c0_i32_8 : i32
    %10 = arith.extui %9 : i1 to i32
    %c0_i32_9 = arith.constant 0 : i32
    %11 = arith.cmpi ne, %10, %c0_i32_9 : i32
    scf.if %11 {
      %c0_10 = arith.constant 0 : index
      %c0_11 = arith.constant 0 : index
      %12 = vector.load %arg6[%c0_10, %c0_11] : memref<2x64xf32, #tpu.memory_space<vmem>>, vector<2x64xf32>
      %cst_12 = arith.constant 1.250000e-01 : f32
      %13 = vector.broadcast %cst_12 : f32 to vector<2x64xf32>
      %14 = arith.mulf %12, %13 : vector<2x64xf32>
      %c0_13 = arith.constant 0 : index
      %c0_14 = arith.constant 0 : index
      %15 = vector.load %arg4[%c0_13, %c0_14] : memref<1x64xf32, #tpu.memory_space<vmem>>, vector<1x64xf32>
      %16 = vector.broadcast %15 : vector<1x64xf32> to vector<2x64xf32>
      %17 = arith.addf %14, %16 : vector<2x64xf32>
      %18 = vector.shape_cast %17 : vector<2x64xf32> to vector<2x4x16xf32>
      %19 = arith.mulf %18, %18 : vector<2x4x16xf32>
      %cst_15 = arith.constant dense<0.000000e+00> : vector<2x4xf32>
      %20 = vector.multi_reduction <add>, %19, %cst_15 [2] : vector<2x4x16xf32> to vector<2x4xf32>
      %21 = vector.shape_cast %20 : vector<2x4xf32> to vector<2x4x1xf32>
      %cst_16 = arith.constant 1.000000e+00 : f32
      %22 = vector.broadcast %cst_16 : f32 to vector<2x4x1xf32>
      %23 = arith.addf %22, %21 : vector<2x4x1xf32>
      %24 = arith.divf %21, %23 : vector<2x4x1xf32>
      %25 = vector.broadcast %24 : vector<2x4x1xf32> to vector<2x4x16xf32>
      %26 = arith.mulf %25, %18 : vector<2x4x16xf32>
      %27 = math.sqrt %21 : vector<2x4x1xf32>
      %28 = vector.broadcast %27 : vector<2x4x1xf32> to vector<2x4x16xf32>
      %29 = arith.divf %26, %28 : vector<2x4x16xf32>
      %30 = vector.shape_cast %29 : vector<2x4x16xf32> to vector<2x64xf32>
      %c0_17 = arith.constant 0 : index
      %c0_18 = arith.constant 0 : index
      %31 = vector.load %arg5[%c0_17, %c0_18] : memref<2x64xf32, #tpu.memory_space<vmem>>, vector<2x64xf32>
      tpu.vector_store %arg5[%c0_17, %c0_18], %30 {strides = array<i32>} : memref<2x64xf32, #tpu.memory_space<vmem>>, vector<2x64xf32>,
    } else {
    }
    return
  }
  func.func @transform_0(%arg0: i32, %arg1: i32) -> (i32, i32) {
    %c0_i32 = arith.constant 0 : i32
    return %arg0, %arg1 : i32, i32
  }
  func.func @transform_1(%arg0: i32, %arg1: i32) -> (i32, i32) {
    %c0_i32 = arith.constant 0 : i32
    %c0_i32_0 = arith.constant 0 : i32
    return %arg1, %c0_i32 : i32, i32
  }
  func.func @transform_2(%arg0: i32, %arg1: i32) -> (i32, i32) {
    %c0_i32 = arith.constant 0 : i32
    %c0_i32_0 = arith.constant 0 : i32
    %c0_i32_1 = arith.constant 0 : i32
    return %c0_i32, %c0_i32_0 : i32, i32
  }
  func.func @transform_3(%arg0: i32, %arg1: i32) -> (i32, i32) {
    %c0_i32 = arith.constant 0 : i32
    %c0_i32_0 = arith.constant 0 : i32
    return %arg0, %c0_i32 : i32, i32
  }
}

</mosaic_0001>

<bundles_post_ra>
// kernel: tpu_custom_call.1
= control target key start
LH: loop header
LB: loop body
LE: loop exit
PB: predicated region body
PF: predicated region fallthrough
CT: control target
= control target key end

     0   :  { %8 = vsyncpa [#allocation4], 0  ;;  %s498_s0 = inlined_call_operand.hbm [shape: bf16[2,64], index: 0, kind: input, shape index: {}]   ;;  %s499_s1 = inlined_call_operand.hbm [shape: bf16[64,64], index: 1, kind: input, shape index: {}]   ;;  %s500_s2 = inlined_call_operand.vmem [shape: f32[1,64], index: 2, kind: input, shape index: {}]   ;;  %s501_s3 = inlined_call_operand.hbm [shape: f32[2,64], index: 3, kind: output, shape index: {}]  }
   0x1   :  { %9 = vsyncpa [#allocation7], 0 }
   0x2   :  { %10 = vsyncpa [#allocation5], 0  ;;  %s405_s12 = smov [#allocation3]   ;;  %s406_s14 = smov [#allocation6]  }
   0x3   :  { %s17_s13 = sshll.u32 %s405_s12, 4  ;;  %s26_s15 = sshll.u32 %s406_s14, 4  ;;  %s18_s13 = int_to_ptr.vmem [resolvable:$true] %s17_s13  ;;  %s440_s15 = int_to_ptr.vmem [resolvable:$true] %s26_s15 }
   0x4   :  { %s333_s18 = scalar_lea.hbm %s498_s0, 16 }
   0x5   :  { %p334_p0 = scmp.ne.s32.totalorder %s498_s0, %s333_s18  ;;  %p337_p1 = scmp.lt.u32.totalorder %s333_s18, %s498_s0 }
   0x7   :  { %p339_p2 = pnand %p337_p1, %p334_p0 }
   0x9   :  { %342 = shalt.err (!%p339_p2)
}
   0xa   :  { %s343_s23 = scalar_lea.vmem %s18_s13, 16  ;;  %s347_s24 = scalar_lea.vmem %s18_s13, 32 }
   0xb   :  { %p344_p3 = scmp.ne.s32.totalorder %s18_s13, %s343_s23  ;;  %p348_p4 = scmp.lt.s32.totalorder %s18_s13, %s18_s13 }
   0xc   :  { %p349_p5 = scmp.lt.s32.totalorder %s347_s24, %s343_s23 }
   0xe   :  { %p350_p6 = por %p349_p5, %p348_p4 }
  0x10   :  { %p351_p7 = pnand %p350_p6, %p344_p3 }
  0x12   :  { %354 = shalt.err (!%p351_p7)
}
  0x13   :  { %20 = dma.hbm_to_vmem [thread:$0]  %s498_s0, 16, %s18_s13, [#allocation4]  }
  0x14   :  { %s355_s29 = scalar_lea.hbm %s499_s1, 512 }
  0x15   :  { %p356_p8 = scmp.ne.s32.totalorder %s499_s1, %s355_s29  ;;  %p359_p9 = scmp.lt.u32.totalorder %s355_s29, %s499_s1 }
  0x17   :  { %p361_p10 = pnand %p359_p9, %p356_p8 }
  0x19   :  { %364 = shalt.err (!%p361_p10)
}
  0x1a   :  { %s365_s7 = scalar_lea.vmem %s440_s15, 512  ;;  %p370_p12 = scmp.lt.s32.totalorder %s440_s15, %s440_s15 }
  0x1b   :  { %p366_p11 = scmp.ne.s32.totalorder %s440_s15, %s365_s7  ;;  %p371_p13 = scmp.lt.s32.totalorder %s365_s7, %s365_s7 }
  0x1d   :  { %p372_p0 = por %p371_p13, %p370_p12 }
  0x1f   :  { %p373_p1 = pnand %p372_p0, %p366_p11 }
  0x21   :  { %376 = shalt.err (!%p373_p1)
}
  0x22   :  { %s407_s0 = smov 64   ;;  %s408_s8 = smov 4  }
  0x23   :  { %32 = dma.hbm_to_vmem [thread:$0]  %s499_s1, 512, %s440_s15, [#allocation7], %s407_s0, %s407_s0, %s408_s8  }
  0x24   :  { %399 = dma.done.wait [#allocation4], 16  }
  0x25   :  { %400 = vsyncadd [#allocation4], 4294967280 }
  0x26   :  { %401 = dma.done.wait [#allocation7], 512  }
  0x27   :  { %402 = vsyncadd [#allocation7], 4294966784  ;;  %vm46_vm0 = vcmask 517120   ;;  %v409_v0 = vmov 0.0   ;;  %vm410_vm1 = vmmov 0   ;;  %v317_v1 = vld [vmem:[#allocation6] sm:$0xff]   ;;  %v156_v18 = vlaneseq }
  0x28   :  { %290 = vmatprep.subr.bf16.mxu0 %v409_v0  ;;  %298 = vmatprep.mubr.msk.bf16.mxu0 %vm410_vm1, %v409_v0  ;;  %47 = vst.msk [vmem:[#allocation2] sm:$0x3] %vm46_vm0, %v409_v0  ;;  %v318_v2 = vld [vmem:[#allocation6 + $0x8] sm:$0xff]   ;;  %v319_v3 = vld [vmem:[#allocation6 + $0x10] sm:$0xff]   ;;  %v320_v4 = vld [vmem:[#allocation6 + $0x18] sm:$0xff]   ;;  %vm82_vm2 = vcmask 523264  }
  0x29   :  { %291 = vmatpush3.bf16.msra.mxu0 %v317_v1  ;;  %v49_v5 = vld [vmem:[#allocation3] sm:$0x1]  ;;  %v284_v13 = vld [vmem:[%s500_s2] ss:$0 sm:$0xff]  ;;  %s411_s12 = smov 80   ;;  %s412_s13 = smov 112  }
  0x2a   :  { %292 = vmatprep.subr.bf16.mxu0 %v409_v0  ;;  %s413_s14 = smov 96   ;;  %v414_v16 = vmov 1983009808   ;;  %v157_v20 = vshrl.u32 %v156_v18, 7  ;;  %v415_v21 = vmov 1934713408  }
  0x2b   :  { %v154_v17 = vunpack.c.l.s4 %v414_v16  ;;  %v170_v22 = vunpack.c.l.s4 %v415_v21  ;;  %vm179_vm3 = vcmask 125952   ;;  %s416_s2 = smov 32   ;;  %s417_s15 = smov 16   ;;  %vm256_vm8 = vcmask 130048  }
  0x2c   :  { %s418_s16 = smov 48   ;;  %vm258_vm9 = vcmask 261120   ;;  %s419_s17 = smov [#allocation8]   ;;  %vm260_vm10 = vcmask 392192  }
  0x2d   :  { %293 = vmatpush3.bf16.msra.mxu0 %v318_v2  ;;  %v155_v19 = vunpack.c.0.s8 %v154_v17  ;;  %v171_v27 = vunpack.c.0.s8 %v170_v22  ;;  %s269_s18 = sshll.u32 %s419_s17, 4  ;;  %s270_s18 = int_to_ptr.vmem [resolvable:$true] %s269_s18 }
  0x2e   :  { %294 = vmatprep.subr.bf16.mxu0 %v409_v0  ;;  %s377_s19 = scalar_lea.vmem %s270_s18, 32  ;;  %p382_p3 = scmp.lt.s32.totalorder %s270_s18, %s270_s18 }
  0x2f   :  { %v48_v6 = vld [vmem:[#allocation2] sm:$0x3]  ;;  %v158_v25 = vsub.s32 %v155_v19, %v157_v20  ;;  %v174_v31 = vsub.s32 %v171_v27, %v157_v20  ;;  %p378_p2 = scmp.ne.s32.totalorder %s270_s18, %s377_s19  ;;  %p383_p4 = scmp.lt.s32.totalorder %s377_s19, %s377_s19 }
  0x31   :  { %295 = vmatpush3.bf16.msra.mxu0 %v319_v3  ;;  %p384_p5 = por %p383_p4, %p382_p3 }
  0x32   :  { %296 = vmatprep.subr.bf16.mxu0 %v409_v0 }
  0x33   :  { %p385_p6 = pnand %p384_p5, %p378_p2 }
  0x35   :  { %297 = vmatpush3.bf16.msra.mxu0 %v320_v4 }
  0x38   :  { %299 = vmatmul.mubr.msk.bf16.vlgmr.msra.gmra.mrb[0].mxu0 %vm82_vm2, %v49_v5 }
 0x10b   :  { %v120_v7 = vpop.f32.mrb[0].mxu0 }
 0x10c   :  { %v126_v8 = vadd.f32 %v120_v7, %v48_v6  ;;  %v300_v9 = vpop.f32.mrb[1].mxu0 }
 0x10d   :  { %v123_v10 = vpop.f32.mrb[2].mxu0 }
 0x10e   :  { %128 = vst.msk [vmem:[#allocation2] sm:$0x3] %vm46_vm0, %v126_v8  ;;  %v301_v11 = vpop.f32.mrb[3].mxu0 }
 0x115   :  { %v132_v12 = vld [vmem:[#allocation2] sm:$0x3] }
 0x116   :  { %v133_v14 = vmul.f32 0.125, %v132_v12 }
 0x118   :  { %v141_v15 = vadd.f32 %v284_v13, %v133_v14 }
 0x11a   :  { %149 = vrot.lane.b32.xlu1 %v141_v15, %s411_s12  ;;  %143 = vrot.lane.b32.xlu0 %v141_v15, %s412_s13 }
 0x11e   :  { %146 = vrot.lane.b32.xlu0 %v141_v15, %s413_s14 }
 0x18c   :  { %v150_v23 = vpop.permute.xlu1 %149  ;;  %v144_v24 = vpop.permute.xlu0 %143 }
 0x18d   :  { %v160_v26 = vcombine.low %v144_v24, %v150_v23 }
 0x18f   :  { %v167_v30 = vrot.slane %v160_v26, %v158_v25 }
 0x190   :  { %v147_v28 = vpop.permute.xlu0 %146 }
 0x191   :  { %v152_v29 = vcombine.low %v141_v15, %v147_v28 }
 0x193   :  { %v159_v32 = vrot.slane %v152_v29, %v158_v25 }
 0x195   :  { %v168_v33 = vcombine.low %v159_v32, %v167_v30 }
 0x197   :  { %v175_v34 = vrot.slane %v168_v33, %v174_v31 }
 0x199   :  { %v177_v35 = vmul.f32 %v175_v34, %v175_v34  ;;  %v176_v36 = vcombine.high %v175_v34, %v409_v0 }
 0x19b   :  { %v180_v37 = vsel %vm179_vm3, %v177_v35, 0.0  ;;  %v178_v38 = vmul.f32 %v176_v36, %v176_v36 }
 0x19c   :  { %181 = vadd.xlane.f32.xlu1 %v180_v37 }
 0x19d   :  { %v183_v39 = vsel %vm179_vm3, %v178_v38, 0.0 }
 0x19e   :  { %184 = vadd.xlane.f32.xlu0 %v183_v39 }
 0x229   :  { %v182_v40 = vpop.xlane.xlu1 %181 }
 0x22a   :  { %321 = vrsqrt.f32 %v182_v40  ;;  %v186_v42 = vadd.f32 1.0, %v182_v40  ;;  %vm196_vm4 = vcmp.eq.f32.partialorder %v182_v40, inf  ;;  %v199_v46 = vand.u32 2147483648, %v182_v40 }
 0x22b   :  { %v185_v41 = vpop.xlane.xlu0 %184  ;;  %vm198_vm5 = vcmp.eq.f32.partialorder %v182_v40, 0.0 }
 0x22c   :  { %323 = vrsqrt.f32 %v185_v41  ;;  %v187_v43 = vadd.f32 1.0, %v185_v41  ;;  %vm203_vm6 = vcmp.eq.f32.partialorder %v185_v41, inf  ;;  %v206_v51 = vand.u32 2147483648, %v185_v41 }
 0x22d   :  { %325 = vrcp.f32 %v186_v42  ;;  %vm205_vm7 = vcmp.eq.f32.partialorder %v185_v41, 0.0 }
 0x22e   :  { %327 = vrcp.f32 %v187_v43 }
 0x234   :  { %v322_v44 = vpop.eup %321 }
 0x235   :  { %v195_v45 = vmul.f32 %v322_v44, %v182_v40 }
 0x236   :  { %v324_v47 = vpop.eup %323 }
 0x237   :  { %v197_v48 = vsel %vm196_vm4, %v182_v40, %v195_v45  ;;  %v202_v49 = vmul.f32 %v324_v47, %v185_v41  ;;  %v326_v54 = vpop.eup %325 }
 0x238   :  { %v200_v50 = vsel %vm198_vm5, %v199_v46, %v197_v48  ;;  %v328_v55 = vpop.eup %327  ;;  %v189_v56 = vmul.f32 %v326_v54, %v182_v40 }
 0x239   :  { %329 = vrcp.f32 %v200_v50  ;;  %v204_v52 = vsel %vm203_vm6, %v185_v41, %v202_v49  ;;  %v191_v57 = vmul.f32 %v328_v55, %v185_v41 }
 0x23a   :  { %v207_v53 = vsel %vm205_vm7, %v206_v51, %v204_v52  ;;  %v192_v59 = vmul.f32 %v189_v56, %v175_v34 }
 0x23b   :  { %331 = vrcp.f32 %v207_v53  ;;  %v193_v60 = vmul.f32 %v191_v57, %v176_v36 }
 0x243   :  { %v330_v58 = vpop.eup %329 }
 0x244   :  { %v209_v61 = vmul.f32 %v330_v58, %v192_v59 }
 0x245   :  { %v332_v62 = vpop.eup %331 }
 0x246   :  { %v218_v63 = vmul.f32 %v332_v62, %v193_v60  ;;  %v216_v1 = vrot.slane %v209_v61, %v158_v25 }
 0x248   :  { %v225_v2 = vrot.slane %v218_v63, %v158_v25 }
 0x24a   :  { %v227_v3 = vcombine.high %v216_v1, %v225_v2  ;;  %v226_v4 = vcombine.low %v216_v1, %v225_v2 }
 0x24c   :  { %v241_v5 = vrot.slane %v227_v3, %v174_v31  ;;  %v234_v6 = vrot.slane %v226_v4, %v174_v31 }
 0x24e   :  { %249 = vrot.lane.b32.xlu1 %v241_v5, %s416_s2  ;;  %v242_v7 = vcombine.high %v234_v6, %v409_v0  ;;  %v243_v8 = vcombine.high %v241_v5, %v409_v0 }
 0x250   :  { %245 = vrot.lane.b32.xlu0 %v242_v7, %s417_s15 }
 0x252   :  { %253 = vrot.lane.b32.xlu1 %v243_v8, %s418_s16 }
 0x2c0   :  { %v250_v9 = vpop.permute.xlu1 %249 }
 0x2c2   :  { %v246_v10 = vpop.permute.xlu0 %245 }
 0x2c3   :  { %v257_v11 = vsel %vm256_vm8, %v234_v6, %v246_v10 }
 0x2c4   :  { %v254_v12 = vpop.permute.xlu1 %253  ;;  %v259_v13 = vsel %vm258_vm9, %v257_v11, %v250_v9 }
 0x2c5   :  { %v261_v14 = vsel %vm260_vm10, %v259_v13, %v254_v12 }
 0x2c6   :  { %262 = vst.msk [vmem:[#allocation8] sm:$0x3] %vm46_vm0, %v261_v14 }
 0x2c7   :  { %388 = shalt.err (!%p385_p6)
}
 0x2c8   :  { %s389_s22 = scalar_lea.hbm %s501_s3, 32 }
 0x2c9   :  { %p390_p7 = scmp.ne.s32.totalorder %s501_s3, %s389_s22  ;;  %p393_p8 = scmp.lt.u32.totalorder %s389_s22, %s501_s3 }
 0x2cb   :  { %p395_p9 = pnand %p393_p8, %p390_p7 }
 0x2cd   :  { %398 = shalt.err (!%p395_p9)
}
 0x2ce   :  { %272 = dma.vmem_to_hbm [thread:$0]  %s270_s18, 32, %s501_s3, [#allocation5]  }
 0x2cf   :  { %403 = dma.done.wait [#allocation5], 32  }
 0x2d0   :  { %404 = vsyncadd [#allocation5], 4294967264 }
 0x2d1   :  { %276 = vsyncpa [#allocation4], 1 }
 0x2d2   :  { %277 = vsyncpa [#allocation7], 1 }
 0x2d3   :  { %278 = vsyncpa [#allocation5], 1 }

</bundles_post_ra>
